<compile_context>
chip_gen: v7x
topology: tpu7x:2x2x1
jax: 0.10.0
libtpu: 0.0.40
codegen_flags: <defaults>
</compile_context>

<pallas_src>
import functools

import jax
import jax.numpy as jnp
from jax.experimental import pallas as pl
from jax.experimental.pallas import tpu as pltpu


def _gce_kernel(logits_ref, label_ref, rows_ref, *, q):
    """Per-B-tile kernel: writes per-row loss contributions (TILE_B, 1)."""
    eps = 1e-07
    inv_q = 1.0 / q

    logits = logits_ref[...].astype(jnp.float32)   # (TILE_B, T)
    label = label_ref[...].astype(jnp.float32)     # (TILE_B, T)
    t = logits.shape[1]

    one_minus_label = 1.0 - label                  # computed once, reused below

    # Per-row normalizers.  neg_sum derived arithmetically (saves one XLU
    # full-width lane reduction): sum(1 - label) == T - sum(label).
    pos_sum = jnp.sum(label, axis=1, keepdims=True)          # (TILE_B, 1)
    neg_sum = jnp.float32(t) - pos_sum                        # (TILE_B, 1)

    # Generalized CE terms; fractional pow lowers to EUP exp/log on TPU.
    first = jnp.sum((1.0 - (logits + eps) ** q) * label,
                    axis=1, keepdims=True) * inv_q            # (TILE_B, 1)
    second = jnp.sum((1.0 - (1.0 - logits + eps) ** q) * one_minus_label,
                     axis=1, keepdims=True) * inv_q           # (TILE_B, 1)

    # Two divides per row (negligible vs ~2*T pow/row); kept exact so we match
    # the reference to tight tolerance.
    rows_ref[...] = first / (pos_sum + eps) + second / (neg_sum + eps)


def _choose_tile_b(B, T, bytes_per_elem=4):
    """Pick a B tile so 2 inputs x 2 pipeline buffers stay under ~12 MiB.

    12 MiB keeps double-buffering alive even under v5e's 16 MiB scoped-VMEM
    default and v7x's smaller (64 MiB physical) VMEM.
    """
    budget = 12 * 1024 * 1024
    tile = budget // (4 * T * bytes_per_elem)
    tile = max(8, min(512, (tile // 8) * 8))
    # Never tile wider than the (8-rounded-up) batch itself.
    tile = min(tile, max(8, ((B + 7) // 8) * 8))
    return tile


def generalized_ce(logits, label, q):
    """Pallas wrapper. logits, label: (B, T). Returns scalar f32 loss."""
    assert logits.shape[0] == label.shape[0]
    assert logits.shape[1] == label.shape[1]
    B, T = logits.shape

    tile_b = _choose_tile_b(B, T, bytes_per_elem=jnp.dtype(logits.dtype).itemsize)
    b_pad = ((B + tile_b - 1) // tile_b) * tile_b
    if b_pad != B:
        # Zero-pad tail rows; they produce finite garbage that is sliced off
        # below before the mean, so no in-kernel masking is needed.
        pad = ((0, b_pad - B), (0, 0))
        logits = jnp.pad(logits, pad)
        label = jnp.pad(label, pad)

    grid = (b_pad // tile_b,)
    kernel = functools.partial(_gce_kernel, q=q)

    rows = pl.pallas_call(
        kernel,
        out_shape=jax.ShapeDtypeStruct((b_pad, 1), jnp.float32),
        grid=grid,
        # T stays a single full-extent block dim (no lane padding / masking
        # issues); TILE_B is a multiple of 8, satisfying the (8, 128) rule.
        in_specs=[
            pl.BlockSpec((tile_b, T), lambda i: (i, 0)),
            pl.BlockSpec((tile_b, T), lambda i: (i, 0)),
        ],
        out_specs=pl.BlockSpec((tile_b, 1), lambda i: (i, 0)),
        compiler_params=pltpu.CompilerParams(
            dimension_semantics=("parallel",),
        ),
    )(logits, label)

    # Tiny final reduction in the wrapper: mean over the *real* B rows only.
    return jnp.sum(rows[:B, 0]) / B


def generalized_ce_ref(logits, label, q):
    """Pure-JAX reference mirroring the PyTorch forward."""
    eps = 1e-07
    logits = logits.astype(jnp.float32)
    label = label.astype(jnp.float32)
    pos_factor = jnp.sum(label, axis=1) + eps
    neg_factor = jnp.sum(1.0 - label, axis=1) + eps
    first_term = jnp.mean(
        jnp.sum((1.0 - (logits + eps) ** q) / q * label, axis=1) / pos_factor)
    second_term = jnp.mean(
        jnp.sum((1.0 - (1.0 - logits + eps) ** q) / q * (1.0 - label), axis=1) / neg_factor)
    return first_term + second_term


if __name__ == "__main__":
    q = 0.7  # module hyperparameter (deterministic, set in-script)
    B, T = 2, 16

    key = jax.random.PRNGKey(0)
    k1, k2 = jax.random.split(key)
    # logits act like probabilities in [0, 1]; label is binary.
    logits = jax.nn.sigmoid(jax.random.normal(k1, (B, T), dtype=jnp.float32))
    label = (jax.random.uniform(k2, (B, T)) < 0.5).astype(jnp.float32)

    out = generalized_ce(logits, label, q)
    out = jax.block_until_ready(out)

    ref = generalized_ce_ref(logits, label, q)
    assert jnp.allclose(out, ref, rtol=1e-5, atol=1e-5), (out, ref)

    # Also exercise a shape that spans several grid tiles + B-tail padding.
    B2, T2 = 67, 384
    k3, k4 = jax.random.split(k2)
    logits2 = jax.nn.sigmoid(jax.random.normal(k3, (B2, T2), dtype=jnp.float32))
    label2 = (jax.random.uniform(k4, (B2, T2)) < 0.5).astype(jnp.float32)
    out2 = jax.block_until_ready(generalized_ce(logits2, label2, q))
    ref2 = generalized_ce_ref(logits2, label2, q)
    assert jnp.allclose(out2, ref2, rtol=1e-5, atol=1e-5), (out2, ref2)

    print("KERNEL_OK")
</pallas_src>

<mosaic_0001>
module attributes {stable_mosaic.version = 11 : i64} {
  func.func @_gce_kernel(%arg0: i32, %arg1: memref<8x16xf32, #tpu.memory_space<vmem>>, %arg2: memref<8x16xf32, #tpu.memory_space<vmem>>, %arg3: memref<8x1xf32, #tpu.memory_space<vmem>>) attributes {dimension_semantics = [#tpu.dimension_semantics<parallel>], iteration_bounds = array<i64: 1>, scalar_prefetch = 0 : i64, scratch_operands = 0 : i64, tpu.core_type = #tpu.core_type<tc>, window_params = [{transform_indices = @transform_0, window_bounds = array<i64: 8, 16>}, {transform_indices = @transform_1, window_bounds = array<i64: 8, 16>}, {transform_indices = @transform_2, window_bounds = array<i64: 8, 1>}]} {
    %c0 = arith.constant 0 : index
    %c0_0 = arith.constant 0 : index
    %0 = vector.load %arg1[%c0, %c0_0] : memref<8x16xf32, #tpu.memory_space<vmem>>, vector<8x16xf32>
    %c0_1 = arith.constant 0 : index
    %c0_2 = arith.constant 0 : index
    %1 = vector.load %arg2[%c0_1, %c0_2] : memref<8x16xf32, #tpu.memory_space<vmem>>, vector<8x16xf32>
    %cst = arith.constant 1.000000e+00 : f32
    %2 = vector.broadcast %cst : f32 to vector<8x16xf32>
    %3 = arith.subf %2, %1 : vector<8x16xf32>
    %cst_3 = arith.constant dense<0.000000e+00> : vector<8xf32>
    %4 = vector.multi_reduction <add>, %1, %cst_3 [1] : vector<8x16xf32> to vector<8xf32>
    %5 = vector.shape_cast %4 : vector<8xf32> to vector<8x1xf32>
    %cst_4 = arith.constant 1.600000e+01 : f32
    %6 = vector.broadcast %cst_4 : f32 to vector<8x1xf32>
    %7 = arith.subf %6, %5 : vector<8x1xf32>
    %cst_5 = arith.constant 1.000000e-07 : f32
    %8 = vector.broadcast %cst_5 : f32 to vector<8x16xf32>
    %9 = arith.addf %0, %8 : vector<8x16xf32>
    %cst_6 = arith.constant 0.699999988 : f32
    %10 = vector.broadcast %cst_6 : f32 to vector<8x16xf32>
    %11 = math.powf %9, %10 : vector<8x16xf32>
    %cst_7 = arith.constant 1.000000e+00 : f32
    %12 = vector.broadcast %cst_7 : f32 to vector<8x16xf32>
    %13 = arith.subf %12, %11 : vector<8x16xf32>
    %14 = arith.mulf %13, %1 : vector<8x16xf32>
    %cst_8 = arith.constant dense<0.000000e+00> : vector<8xf32>
    %15 = vector.multi_reduction <add>, %14, %cst_8 [1] : vector<8x16xf32> to vector<8xf32>
    %16 = vector.shape_cast %15 : vector<8xf32> to vector<8x1xf32>
    %cst_9 = arith.constant 1.42857146 : f32
    %17 = vector.broadcast %cst_9 : f32 to vector<8x1xf32>
    %18 = arith.mulf %16, %17 : vector<8x1xf32>
    %cst_10 = arith.constant 1.000000e+00 : f32
    %19 = vector.broadcast %cst_10 : f32 to vector<8x16xf32>
    %20 = arith.subf %19, %0 : vector<8x16xf32>
    %cst_11 = arith.constant 1.000000e-07 : f32
    %21 = vector.broadcast %cst_11 : f32 to vector<8x16xf32>
    %22 = arith.addf %20, %21 : vector<8x16xf32>
    %cst_12 = arith.constant 0.699999988 : f32
    %23 = vector.broadcast %cst_12 : f32 to vector<8x16xf32>
    %24 = math.powf %22, %23 : vector<8x16xf32>
    %cst_13 = arith.constant 1.000000e+00 : f32
    %25 = vector.broadcast %cst_13 : f32 to vector<8x16xf32>
    %26 = arith.subf %25, %24 : vector<8x16xf32>
    %27 = arith.mulf %26, %3 : vector<8x16xf32>
    %cst_14 = arith.constant dense<0.000000e+00> : vector<8xf32>
    %28 = vector.multi_reduction <add>, %27, %cst_14 [1] : vector<8x16xf32> to vector<8xf32>
    %29 = vector.shape_cast %28 : vector<8xf32> to vector<8x1xf32>
    %cst_15 = arith.constant 1.42857146 : f32
    %30 = vector.broadcast %cst_15 : f32 to vector<8x1xf32>
    %31 = arith.mulf %29, %30 : vector<8x1xf32>
    %cst_16 = arith.constant 1.000000e-07 : f32
    %32 = vector.broadcast %cst_16 : f32 to vector<8x1xf32>
    %33 = arith.addf %5, %32 : vector<8x1xf32>
    %34 = arith.divf %18, %33 : vector<8x1xf32>
    %cst_17 = arith.constant 1.000000e-07 : f32
    %35 = vector.broadcast %cst_17 : f32 to vector<8x1xf32>
    %36 = arith.addf %7, %35 : vector<8x1xf32>
    %37 = arith.divf %31, %36 : vector<8x1xf32>
    %38 = arith.addf %34, %37 : vector<8x1xf32>
    %c0_18 = arith.constant 0 : index
    %c0_19 = arith.constant 0 : index
    %39 = vector.load %arg3[%c0_18, %c0_19] : memref<8x1xf32, #tpu.memory_space<vmem>>, vector<8x1xf32>
    tpu.vector_store %arg3[%c0_18, %c0_19], %38 {strides = array<i32>} : memref<8x1xf32, #tpu.memory_space<vmem>>, vector<8x1xf32>,
    return
  }
  func.func @transform_0(%arg0: i32) -> (i32, i32) {
    %c0_i32 = arith.constant 0 : i32
    %c0_i32_0 = arith.constant 0 : i32
    return %arg0, %c0_i32 : i32, i32
  }
  func.func @transform_1(%arg0: i32) -> (i32, i32) {
    %c0_i32 = arith.constant 0 : i32
    %c0_i32_0 = arith.constant 0 : i32
    return %arg0, %c0_i32 : i32, i32
  }
  func.func @transform_2(%arg0: i32) -> (i32, i32) {
    %c0_i32 = arith.constant 0 : i32
    %c0_i32_0 = arith.constant 0 : i32
    return %arg0, %c0_i32 : i32, i32
  }
}

</mosaic_0001>

<bundles_post_ra>
// kernel: tpu_custom_call.1
= control target key start
LH: loop header
LB: loop body
LE: loop exit
PB: predicated region body
PF: predicated region fallthrough
CT: control target
= control target key end

     0   :  { %7 = vsyncpa [#allocation3], 0  ;;  %s236_s0 = inlined_call_operand.hbm [shape: f32[8,16], index: 0, kind: input, shape index: {}]   ;;  %s237_s1 = inlined_call_operand.hbm [shape: f32[8,16], index: 1, kind: input, shape index: {}]   ;;  %s238_s2 = inlined_call_operand.vmem [shape: f32[8,1], index: 2, kind: output, shape index: {}]  }
   0x1   :  { %8 = vsyncpa [#allocation5], 0  ;;  %s189_s9 = smov [#allocation2]   ;;  %s190_s11 = smov [#allocation4]  }
   0x2   :  { %s15_s10 = sshll.u32 %s189_s9, 4  ;;  %s25_s12 = sshll.u32 %s190_s11, 4  ;;  %s16_s10 = int_to_ptr.vmem [resolvable:$true] %s15_s10  ;;  %s26_s12 = int_to_ptr.vmem [resolvable:$true] %s25_s12 }
   0x3   :  { %s141_s15 = scalar_lea.hbm %s236_s0, 128 }
   0x4   :  { %p142_p0 = scmp.ne.s32.totalorder %s236_s0, %s141_s15  ;;  %p145_p1 = scmp.lt.u32.totalorder %s141_s15, %s236_s0 }
   0x6   :  { %p147_p2 = pnand %p145_p1, %p142_p0 }
   0x8   :  { %150 = shalt.err (!%p147_p2)
}
   0x9   :  { %s151_s20 = scalar_lea.vmem %s16_s10, 128  ;;  %p156_p4 = scmp.lt.s32.totalorder %s16_s10, %s16_s10 }
   0xa   :  { %p152_p3 = scmp.ne.s32.totalorder %s16_s10, %s151_s20  ;;  %p157_p5 = scmp.lt.s32.totalorder %s151_s20, %s151_s20 }
   0xc   :  { %p158_p6 = por %p157_p5, %p156_p4 }
   0xe   :  { %p159_p7 = pnand %p158_p6, %p152_p3 }
  0x10   :  { %162 = shalt.err (!%p159_p7)
}
  0x11   :  { %18 = dma.hbm_to_vmem [thread:$0]  %s236_s0, 128, %s16_s10, [#allocation3]  }
  0x12   :  { %s163_s25 = scalar_lea.hbm %s237_s1, 128 }
  0x13   :  { %p164_p8 = scmp.ne.s32.totalorder %s237_s1, %s163_s25  ;;  %p167_p9 = scmp.lt.u32.totalorder %s163_s25, %s237_s1 }
  0x15   :  { %p169_p10 = pnand %p167_p9, %p164_p8 }
  0x17   :  { %172 = shalt.err (!%p169_p10)
}
  0x18   :  { %s173_s30 = scalar_lea.vmem %s26_s12, 128  ;;  %p178_p12 = scmp.lt.s32.totalorder %s26_s12, %s26_s12 }
  0x19   :  { %p174_p11 = scmp.ne.s32.totalorder %s26_s12, %s173_s30  ;;  %p179_p13 = scmp.lt.s32.totalorder %s173_s30, %s173_s30 }
  0x1b   :  { %p180_p0 = por %p179_p13, %p178_p12 }
  0x1d   :  { %p181_p1 = pnand %p180_p0, %p174_p11 }
  0x1f   :  { %184 = shalt.err (!%p181_p1)
}
  0x20   :  { %28 = dma.hbm_to_vmem [thread:$0]  %s237_s1, 128, %s26_s12, [#allocation5]  }
  0x21   :  { %185 = dma.done.wait [#allocation3], 128  }
  0x22   :  { %186 = vsyncadd [#allocation3], 4294967168 }
  0x23   :  { %187 = dma.done.wait [#allocation5], 128  }
  0x24   :  { %188 = vsyncadd [#allocation5], 4294967168  ;;  %vm38_vm0 = vcmask 130048   ;;  %v35_v0 = vld [vmem:[#allocation2] sm:$0xff]  ;;  %v36_v1 = vld [vmem:[#allocation4] sm:$0xff]  ;;  %vm67_vm11 = vcmask 7168  }
  0x25   :  { %v43_v2 = vadd.f32 1e-07, %v35_v0  ;;  %v51_v3 = vsub.f32 1.0, %v35_v0  ;;  %v39_v4 = vsel %vm38_vm0, %v36_v1, 0.0  ;;  %v37_v23 = vsub.f32 1.0, %v36_v1 }
  0x26   :  { %40 = vadd.xlane.f32.xlu0 %v39_v4 }
  0x27   :  { %v52_v5 = vadd.f32 1e-07, %v51_v3  ;;  %v79_v6 = vand.u32 2147483647, %v43_v2  ;;  %vm83_vm1 = vcmp.lt.f32.partialorder %v43_v2, 0  ;;  %vm84_vm2 = vcmp.eq.f32.partialorder %v43_v2, 0 }
  0x28   :  { %vm96_vm5 = vcmp.ne.f32.partialorder %v43_v2, %v43_v2  ;;  %vm85_vm7 = vcmp.eq.f32.partialorder %v43_v2, 1065353216 }
  0x29   :  { %129 = vlog2.f32 %v79_v6  ;;  %v105_v7 = vand.u32 2147483647, %v52_v5  ;;  %vm88_vm3 = vcmp.eq.f32.partialorder %v79_v6, 2139095040  ;;  %vm109_vm4 = vcmp.lt.f32.partialorder %v52_v5, 0 }
  0x2a   :  { %vm110_vm6 = vcmp.eq.f32.partialorder %v52_v5, 0  ;;  %vm122_vm9 = vcmp.ne.f32.partialorder %v52_v5, %v52_v5  ;;  %vm111_vm10 = vcmp.eq.f32.partialorder %v52_v5, 1065353216 }
  0x2b   :  { %131 = vlog2.f32 %v105_v7  ;;  %vm114_vm8 = vcmp.eq.f32.partialorder %v105_v7, 2139095040 }
  0x33   :  { %v130_v8 = vpop.eup %129 }
  0x34   :  { %v81_v9 = vmul.f32 0.7, %v130_v8 }
  0x35   :  { %v132_v10 = vpop.eup %131 }
  0x36   :  { %133 = vpow2.f32 %v81_v9  ;;  %v107_v11 = vmul.f32 0.7, %v132_v10 }
  0x38   :  { %135 = vpow2.f32 %v107_v11 }
  0x40   :  { %v134_v12 = vpop.eup %133 }
  0x41   :  { %v89_v13 = vsel %vm83_vm1, 2143289344, %v134_v12 }
  0x42   :  { %v136_v14 = vpop.eup %135  ;;  %v90_v15 = vsel %vm84_vm2, 0, %v89_v13 }
  0x43   :  { %v95_v16 = vsel %vm88_vm3, 2139095040, %v90_v15  ;;  %v115_v17 = vsel %vm109_vm4, 2143289344, %v136_v14 }
  0x44   :  { %v99_v18 = vsel %vm96_vm5, 2143289344, %v95_v16  ;;  %v116_v19 = vsel %vm110_vm6, 0, %v115_v17 }
  0x45   :  { %v100_v20 = vsel %vm85_vm7, 1065353216, %v99_v18  ;;  %v121_v21 = vsel %vm114_vm8, 2139095040, %v116_v19 }
  0x46   :  { %v45_v22 = vsub.f32 1.0, %v100_v20  ;;  %v125_v24 = vsel %vm122_vm9, 2143289344, %v121_v21 }
  0x47   :  { %v126_v25 = vsel %vm111_vm10, 1065353216, %v125_v24 }
  0x48   :  { %v46_v26 = vmul.f32 %v45_v22, %v36_v1  ;;  %v54_v27 = vsub.f32 1.0, %v126_v25 }
  0x4a   :  { %v47_v28 = vsel %vm38_vm0, %v46_v26, 0.0  ;;  %v55_v29 = vmul.f32 %v54_v27, %v37_v23 }
  0x4b   :  { %48 = vadd.xlane.f32.xlu0 %v47_v28 }
  0x4c   :  { %v56_v30 = vsel %vm38_vm0, %v55_v29, 0.0 }
  0x4d   :  { %57 = vadd.xlane.f32.xlu1 %v56_v30 }
  0xb3   :  { %v41_v31 = vpop.xlane.xlu0 %40 }
  0xb4   :  { %v42_v32 = vsub.f32 16.0, %v41_v31  ;;  %v60_v33 = vadd.f32 1e-07, %v41_v31 }
  0xb6   :  { %v63_v34 = vadd.f32 1e-07, %v42_v32  ;;  %137 = vrcp.f32 %v60_v33 }
  0xb8   :  { %139 = vrcp.f32 %v63_v34 }
  0xc0   :  { %v138_v36 = vpop.eup %137 }
  0xc2   :  { %v140_v38 = vpop.eup %139 }
  0xd8   :  { %v49_v35 = vpop.xlane.xlu0 %48 }
  0xd9   :  { %v50_v37 = vmul.f32 1.4285715, %v49_v35 }
  0xda   :  { %v58_v39 = vpop.xlane.xlu1 %57 }
  0xdb   :  { %v59_v40 = vmul.f32 1.4285715, %v58_v39  ;;  %v62_v41 = vmul.f32 %v138_v36, %v50_v37 }
  0xdd   :  { %v65_v42 = vmul.f32 %v140_v38, %v59_v40 }
  0xdf   :  { %v66_v43 = vadd.f32 %v65_v42, %v62_v41 }
  0xe1   :  { %68 = vst.msk [vmem:[%s238_s2] sm:$0xff] %vm67_vm11, %v66_v43 }
  0xe2   :  { %73 = vsyncpa [#allocation3], 1 }
  0xe3   :  { %74 = vsyncpa [#allocation5], 1 }

</bundles_post_ra>
